<compile_context>
chip_gen: v7x
topology: tpu7x:2x2x1
jax: 0.10.0
libtpu: 0.0.40
codegen_flags: <defaults>
</compile_context>

<pallas_src>
import functools
from collections import OrderedDict

import jax
import jax.numpy as jnp
from jax.experimental import pallas as pl
from jax.experimental.pallas import tpu as pltpu


_VMEM_LIMIT = 32 * 1024 * 1024  # explicit; safe on v5e/v6e (128 MiB) and v7x (64 MiB)


def _round_up(x, m):
    return ((x + m - 1) // m) * m


# ---------------------------------------------------------------------------
# Pallas kernels
# ---------------------------------------------------------------------------

def _matmul_shift_act_kernel(p_ref, w_ref, shift_ref, o_ref, *, apply_relu):
    """One M-tile of: patches(bf16) @ W(bf16, BN scale pre-folded) + shift (+ReLU).

    p_ref:     (TM, K)  bf16 im2col patches (streamed / double-buffered)
    w_ref:     (K, N)   bf16 weights, resident across the grid
    shift_ref: (1, N)   f32  folded BN shift / bias, resident
    o_ref:     (TM, N)  f32
    """
    acc = jnp.dot(p_ref[...], w_ref[...], preferred_element_type=jnp.float32)
    y = acc + shift_ref[...]
    if apply_relu:
        y = jnp.maximum(y, 0.0)
    o_ref[...] = y.astype(o_ref.dtype)


def _affine_kernel(x_ref, scale_ref, shift_ref, o_ref, *, apply_relu):
    """Per-channel affine (eval-mode BatchNorm) + optional ReLU, one M-tile."""
    y = x_ref[...] * scale_ref[...] + shift_ref[...]
    if apply_relu:
        y = jnp.maximum(y, 0.0)
    o_ref[...] = y.astype(o_ref.dtype)


def _maxpool2x2_kernel(x_ref, o_ref):
    """2x2/stride-2 max-pool from a single input view.

    x_ref: (TR, 2, Wo, 2*C)  rows = (batch*out_row), dim1 = vertical pair,
                             last dim = [left-pixel C chans | right-pixel C chans]
    o_ref: (TR, Wo, C)
    """
    x = x_ref[...]
    v = jnp.maximum(x[:, 0], x[:, 1])          # vertical max   -> (TR, Wo, 2C)
    c = o_ref.shape[-1]
    o_ref[...] = jnp.maximum(v[:, :, :c], v[:, :, c:])   # horizontal max


# ---------------------------------------------------------------------------
# pallas_call wrappers
# ---------------------------------------------------------------------------

def matmul_shift_act(patches, w_mat, shift, apply_relu, *, tm_max=512):
    """M-tiled fused conv matmul: grid over M, weights resident, bf16 MXU."""
    M, K = patches.shape
    Kw, N = w_mat.shape
    assert K == Kw
    TM = min(tm_max, _round_up(M, 8))
    Mp = _round_up(M, TM)
    if Mp != M:
        patches = jnp.pad(patches, ((0, Mp - M), (0, 0)))
    kernel = functools.partial(_matmul_shift_act_kernel, apply_relu=apply_relu)
    out = pl.pallas_call(
        kernel,
        out_shape=jax.ShapeDtypeStruct((Mp, N), jnp.float32),
        grid=(Mp // TM,),
        in_specs=[
            pl.BlockSpec((TM, K), lambda i: (i, 0)),   # streamed patch tiles
            pl.BlockSpec((K, N), lambda i: (0, 0)),    # resident weights
            pl.BlockSpec((1, N), lambda i: (0, 0)),    # resident shift
        ],
        out_specs=pl.BlockSpec((TM, N), lambda i: (i, 0)),
        compiler_params=pltpu.CompilerParams(
            dimension_semantics=("parallel",),          # megacore-shardable M axis
            vmem_limit_bytes=_VMEM_LIMIT,
        ),
    )(patches, w_mat, shift)
    return out[:M] if Mp != M else out


def affine_nhwc(x_nhwc, scale, shift, apply_relu, *, tm_max=1024):
    """Tiled eval-mode BN affine / ReLU fallback (only used when fusion is illegal)."""
    B, H, W, C = x_nhwc.shape
    M = B * H * W
    x2 = x_nhwc.reshape(M, C)
    TM = min(tm_max, _round_up(M, 8))
    Mp = _round_up(M, TM)
    if Mp != M:
        x2 = jnp.pad(x2, ((0, Mp - M), (0, 0)))
    kernel = functools.partial(_affine_kernel, apply_relu=apply_relu)
    out = pl.pallas_call(
        kernel,
        out_shape=jax.ShapeDtypeStruct((Mp, C), jnp.float32),
        grid=(Mp // TM,),
        in_specs=[
            pl.BlockSpec((TM, C), lambda i: (i, 0)),
            pl.BlockSpec((1, C), lambda i: (0, 0)),
            pl.BlockSpec((1, C), lambda i: (0, 0)),
        ],
        out_specs=pl.BlockSpec((TM, C), lambda i: (i, 0)),
        compiler_params=pltpu.CompilerParams(
            dimension_semantics=("parallel",),
            vmem_limit_bytes=_VMEM_LIMIT,
        ),
    )(x2, scale, shift)
    out = out[:M] if Mp != M else out
    return out.reshape(B, H, W, C)


def maxpool2x2(x_nhwc, *, tr_max=256):
    """2x2/stride-2 max-pool, single-input kernel (no XLA strided-slice copies).

    TODO(synk): torchvision ResNet's maxpool is 3x3/stride-2/pad-1; this keeps
    the synthetic base model's 2x2/stride-2 semantics (odd trailing row/col dropped).
    """
    B, H, W, C = x_nhwc.shape
    Ho, Wo = H // 2, W // 2
    if (H % 2) or (W % 2):
        x_nhwc = x_nhwc[:, : 2 * Ho, : 2 * Wo, :]
    R = B * Ho
    xv = x_nhwc.reshape(R, 2, Wo, 2 * C)        # pure contiguous reshape (no copy)
    TR = min(tr_max, R)
    Rp = _round_up(R, TR)
    if Rp != R:
        xv = jnp.pad(xv, ((0, Rp - R), (0, 0), (0, 0), (0, 0)))
    out = pl.pallas_call(
        _maxpool2x2_kernel,
        out_shape=jax.ShapeDtypeStruct((Rp, Wo, C), jnp.float32),
        grid=(Rp // TR,),
        in_specs=[pl.BlockSpec((TR, 2, Wo, 2 * C), lambda i: (i, 0, 0, 0))],
        out_specs=pl.BlockSpec((TR, Wo, C), lambda i: (i, 0, 0)),
        compiler_params=pltpu.CompilerParams(
            dimension_semantics=("parallel",),
            vmem_limit_bytes=_VMEM_LIMIT,
        ),
    )(xv)
    out = out[:R] if Rp != R else out
    return out.reshape(B, Ho, Wo, C)


# ---------------------------------------------------------------------------
# im2col (XLA glue; done in bf16 so the 9x-expanded patches cost half the bytes)
# ---------------------------------------------------------------------------

def im2col(x_nhwc, kh, kw, stride, padding):
    B, H, W, C = x_nhwc.shape
    x_pad = jnp.pad(x_nhwc, ((0, 0), (padding, padding), (padding, padding), (0, 0)))
    Ho = (H + 2 * padding - kh) // stride + 1
    Wo = (W + 2 * padding - kw) // stride + 1
    cols = []
    for di in range(kh):
        for dj in range(kw):
            cols.append(x_pad[:, di:di + stride * Ho:stride,
                              dj:dj + stride * Wo:stride, :])
    # feature index = (di*kw + dj)*C + c  -> must match weight reshape below
    patches = jnp.concatenate(cols, axis=-1)             # (B, Ho, Wo, kh*kw*C)
    return patches.reshape(B * Ho * Wo, kh * kw * C), Ho, Wo


# ---------------------------------------------------------------------------
# Synthetic base model parameters (deterministic init)
# ---------------------------------------------------------------------------

def _init_conv(key, kh, kw, cin, cout):
    # (kh, kw, cin, cout) -> (kh*kw*cin, cout); matches im2col feature order.
    w = 0.1 * jax.random.normal(key, (kh, kw, cin, cout), jnp.float32)
    return w.reshape(kh * kw * cin, cout)


def _init_bn(key, cout, eps=1e-5):
    k1, k2, k3, k4 = jax.random.split(key, 4)
    gamma = 1.0 + 0.1 * jax.random.normal(k1, (cout,), jnp.float32)
    beta = 0.1 * jax.random.normal(k2, (cout,), jnp.float32)
    running_mean = 0.05 * jax.random.normal(k3, (cout,), jnp.float32)
    running_var = 1.0 + 0.1 * jnp.abs(jax.random.normal(k4, (cout,), jnp.float32))
    scale = gamma / jnp.sqrt(running_var + eps)
    shift = beta - running_mean * scale
    return scale.reshape(1, cout), shift.reshape(1, cout)


def build_base_model(key):
    """Children mimic torchvision ResNet: conv1, bn1, relu, maxpool, layer1..3.

    layer1..3 are built with their (frozen, eval-mode) BN scale folded into the
    weight columns and only the shift kept (per review: drop the scale multiply).
    """
    keys = jax.random.split(key, 8)
    c_in, c1, c2, c3, c4 = 4, 16, 32, 64, 128
    modules = OrderedDict()
    modules["conv1"] = dict(
        type="conv", stride=2, padding=1, kh=3, kw=3,
        w_mat=_init_conv(keys[0], 3, 3, c_in, c1),
        shift=jnp.zeros((1, c1), jnp.float32),          # conv1 has no bias
        apply_relu=False)
    bn1_scale, bn1_shift = _init_bn(keys[1], c1)
    modules["bn1"] = dict(type="bn", scale=bn1_scale, shift=bn1_shift)
    modules["relu"] = dict(type="relu")
    modules["maxpool"] = dict(type="maxpool")
    for name, k_w, k_bn, cin, cout, stride in [
        ("layer1", keys[2], keys[3], c1, c2, 1),
        ("layer2", keys[4], keys[5], c2, c3, 2),
        ("layer3", keys[6], keys[7], c3, c4, 1),
    ]:
        scale, shift = _init_bn(k_bn, cout)
        modules[name] = dict(
            type="conv", stride=stride, padding=1, kh=3, kw=3,
            w_mat=_init_conv(k_w, 3, 3, cin, cout) * scale,   # fold BN scale
            shift=shift, apply_relu=True)
    return modules


def fuse_for_inference(modules, return_layers):
    """Merge frozen eval-mode BN and ReLU children into the preceding conv.

    Only legal when the absorbed intermediate outputs are not requested in
    `return_layers` (checked).  Also casts all conv weights to bf16.
    """
    names = list(modules.keys())
    fused = OrderedDict()
    i = 0
    while i < len(names):
        name, mod = names[i], modules[names[i]]
        if mod["type"] != "conv":
            fused[name] = mod
            i += 1
            continue
        w, shift, relu = mod["w_mat"], mod["shift"], mod["apply_relu"]
        j = i
        while j + 1 < len(names) and names[j] not in return_layers:
            nxt = modules[names[j + 1]]
            if nxt["type"] == "bn" and not relu:
                w = w * nxt["scale"]
                shift = shift * nxt["scale"] + nxt["shift"]
                j += 1
            elif nxt["type"] == "relu":
                relu = True
                j += 1
            else:
                break
        fused[names[j]] = dict(
            type="conv", stride=mod["stride"], padding=mod["padding"],
            kh=mod["kh"], kw=mod["kw"],
            w_mat=w.astype(jnp.bfloat16),
            shift=shift.astype(jnp.float32),
            apply_relu=relu)
        i = j + 1
    return fused


# ---------------------------------------------------------------------------
# DetectorBackbone.forward
# ---------------------------------------------------------------------------

def _run_module(x_nhwc, mod):
    if mod["type"] == "conv":
        B = x_nhwc.shape[0]
        patches, Ho, Wo = im2col(x_nhwc.astype(jnp.bfloat16),
                                 mod["kh"], mod["kw"], mod["stride"], mod["padding"])
        out = matmul_shift_act(patches, mod["w_mat"], mod["shift"], mod["apply_relu"])
        return out.reshape(B, Ho, Wo, -1)
    if mod["type"] == "bn":        # fallback when fusion is not legal
        return affine_nhwc(x_nhwc, mod["scale"], mod["shift"], apply_relu=False)
    if mod["type"] == "relu":      # fallback when fusion is not legal
        C = x_nhwc.shape[-1]
        return affine_nhwc(x_nhwc, jnp.ones((1, C), jnp.float32),
                           jnp.zeros((1, C), jnp.float32), apply_relu=True)
    if mod["type"] == "maxpool":
        return maxpool2x2(x_nhwc)
    raise ValueError(mod["type"])


def detector_backbone_forward(modules, return_layers, x_nchw):
    """Mirrors DetectorBackbone.forward: run children in order, collect some."""
    x = jnp.transpose(x_nchw.astype(jnp.float32), (0, 2, 3, 1))  # NCHW -> NHWC
    out = OrderedDict()
    for name, mod in modules.items():
        x = _run_module(x, mod)
        if name in return_layers:
            out[return_layers[name]] = jnp.transpose(x, (0, 3, 1, 2))  # back to NCHW
    return out
    # TODO(synk): requires_grad freezing and train()/set_bn_eval are training-time
    # controls with no forward-pass compute; BN is folded as frozen eval-mode stats.


if __name__ == "__main__":
    key = jax.random.PRNGKey(0)
    k_params, k_x = jax.random.split(key)

    modules = build_base_model(k_params)
    return_layers = {"layer2": "feat2", "layer3": "feat3"}
    fused_modules = fuse_for_inference(modules, return_layers)

    x = jax.random.normal(k_x, (2, 4, 16, 16), jnp.float32)       # NCHW like PyTorch

    outs = detector_backbone_forward(fused_modules, return_layers, x)
    for v in outs.values():
        jax.block_until_ready(v)

    # outs["feat2"]: (2, 64, 2, 2), outs["feat3"]: (2, 128, 2, 2)
    print("KERNEL_OK")
</pallas_src>

<mosaic_0001>
module attributes {stable_mosaic.version = 11 : i64} {
  func.func @_matmul_shift_act_kernel(%arg0: i32, %arg1: memref<128x36xbf16, #tpu.memory_space<vmem>>, %arg2: memref<36x16xbf16, #tpu.memory_space<vmem>>, %arg3: memref<1x16xf32, #tpu.memory_space<vmem>>, %arg4: memref<128x16xf32, #tpu.memory_space<vmem>>) attributes {dimension_semantics = [#tpu.dimension_semantics<parallel>], iteration_bounds = array<i64: 1>, scalar_prefetch = 0 : i64, scratch_operands = 0 : i64, tpu.core_type = #tpu.core_type<tc>, window_params = [{transform_indices = @transform_0, window_bounds = array<i64: 128, 36>}, {pipeline_mode = #tpu.pipeline_mode<synchronous>, transform_indices = @transform_1, window_bounds = array<i64: 36, 16>}, {pipeline_mode = #tpu.pipeline_mode<synchronous>, transform_indices = @transform_2, window_bounds = array<i64: 1, 16>}, {transform_indices = @transform_3, window_bounds = array<i64: 128, 16>}]} {
    %c0 = arith.constant 0 : index
    %c0_0 = arith.constant 0 : index
    %0 = vector.load %arg1[%c0, %c0_0] : memref<128x36xbf16, #tpu.memory_space<vmem>>, vector<128x36xbf16>
    %c0_1 = arith.constant 0 : index
    %c0_2 = arith.constant 0 : index
    %1 = vector.load %arg2[%c0_1, %c0_2] : memref<36x16xbf16, #tpu.memory_space<vmem>>, vector<36x16xbf16>
    %cst = arith.constant dense<0.000000e+00> : vector<128x16xf32>
    %2 = tpu.matmul %0, %1, %cst {dimension_numbers = #tpu.dot_dimension_numbers<[1], [0], [0], [1], [0, 0, 1, 1], [], []>} : vector<128x36xbf16>, vector<36x16xbf16>, vector<128x16xf32> -> vector<128x16xf32>
    %c0_3 = arith.constant 0 : index
    %c0_4 = arith.constant 0 : index
    %3 = vector.load %arg3[%c0_3, %c0_4] : memref<1x16xf32, #tpu.memory_space<vmem>>, vector<1x16xf32>
    %4 = vector.broadcast %3 : vector<1x16xf32> to vector<128x16xf32>
    %5 = arith.addf %2, %4 : vector<128x16xf32>
    %cst_5 = arith.constant 0.000000e+00 : f32
    %6 = vector.broadcast %cst_5 : f32 to vector<128x16xf32>
    %7 = arith.maximumf %5, %6 : vector<128x16xf32>
    %c0_6 = arith.constant 0 : index
    %c0_7 = arith.constant 0 : index
    %8 = vector.load %arg4[%c0_6, %c0_7] : memref<128x16xf32, #tpu.memory_space<vmem>>, vector<128x16xf32>
    tpu.vector_store %arg4[%c0_6, %c0_7], %7 {strides = array<i32>} : memref<128x16xf32, #tpu.memory_space<vmem>>, vector<128x16xf32>,
    return
  }
  func.func @transform_0(%arg0: i32) -> (i32, i32) {
    %c0_i32 = arith.constant 0 : i32
    %c0_i32_0 = arith.constant 0 : i32
    return %arg0, %c0_i32 : i32, i32
  }
  func.func @transform_1(%arg0: i32) -> (i32, i32) {
    %c0_i32 = arith.constant 0 : i32
    %c0_i32_0 = arith.constant 0 : i32
    %c0_i32_1 = arith.constant 0 : i32
    return %c0_i32, %c0_i32_0 : i32, i32
  }
  func.func @transform_2(%arg0: i32) -> (i32, i32) {
    %c0_i32 = arith.constant 0 : i32
    %c0_i32_0 = arith.constant 0 : i32
    %c0_i32_1 = arith.constant 0 : i32
    return %c0_i32, %c0_i32_0 : i32, i32
  }
  func.func @transform_3(%arg0: i32) -> (i32, i32) {
    %c0_i32 = arith.constant 0 : i32
    %c0_i32_0 = arith.constant 0 : i32
    return %arg0, %c0_i32 : i32, i32
  }
}

</mosaic_0001>

<bundles_post_ra>
// kernel: tpu_custom_call.1
= control target key start
LH: loop header
LB: loop body
LE: loop exit
PB: predicated region body
PF: predicated region fallthrough
CT: control target
= control target key end

     0   :  { %vm98_vm0 = vcmask 293888   ;;  %vm123_vm1 = vcmask 1041408   ;;  %vm240_vm2 = vcmask 130048   ;;  %s461_s1 = inlined_call_operand.vmem [shape: bf16[36,16], index: 1, kind: input, shape index: {}]   ;;  %s462_s0 = inlined_call_operand.vmem [shape: bf16[128,36], index: 0, kind: input, shape index: {}]   ;;  %s463_s2 = inlined_call_operand.vmem [shape: f32[1,16], index: 2, kind: input, shape index: {}]   ;;  %s464_s3 = inlined_call_operand.vmem [shape: f32[128,16], index: 3, kind: output, shape index: {}]  }
   0x1   :  { %v322_v0 = vld [vmem:[%s461_s1] sm:$0xff]   ;;  %v323_v1 = vld [vmem:[%s461_s1 + $0x8] sm:$0xff]   ;;  %v324_v2 = vld [vmem:[%s461_s1 + $0x10] ss:$0 sps:$4 sm:$0x33]  }
   0x2   :  { %292 = vmatprep.subr.bf16.mxu0 %v322_v0  ;;  %314 = vmatprep.subr.bf16.mxu1 %v322_v0  ;;  %v325_v3 = vld [vmem:[%s462_s0] sm:$0xff]   ;;  %v125_v5 = vsel %vm123_vm1, %v324_v2, 0  ;;  %v327_v6 = vld [vmem:[%s462_s0 + $0x8] sm:$0xff]   ;;  %v329_v8 = vld [vmem:[%s462_s0 + $0x10] sm:$0xff]  }
   0x3   :  { %293 = vmatpush3.bf16.msra.mxu0 %v322_v0  ;;  %317 = vmatpush3.bf16.msra.mxu1 %v322_v0  ;;  %v326_v4 = vld [vmem:[%s462_s0 + $0x20] sm:$0xff]   ;;  %v328_v7 = vld [vmem:[%s462_s0 + $0x28] sm:$0xff]   ;;  %v330_v9 = vld [vmem:[%s462_s0 + $0x30] sm:$0xff]  }
   0x4   :  { %294 = vmatprep.subr.bf16.mxu0 %v323_v1  ;;  %315 = vmatprep.subr.bf16.mxu1 %v323_v1  ;;  %v331_v10 = vld [vmem:[%s462_s0 + $0x18] sm:$0xff]   ;;  %v261_v12 = vld [vmem:[%s463_s2] ss:$0 sm:$0xff] }
   0x5   :  { %298 = vmatprep.mubr.msk.bf16.mxu0 %vm98_vm0, %v325_v3  ;;  %306 = vmatprep.mubr.msk.bf16.mxu1 %vm98_vm0, %v326_v4  ;;  %v332_v11 = vld [vmem:[%s462_s0 + $0x38] sm:$0xff]  }
   0x7   :  { %295 = vmatpush3.bf16.msra.mxu0 %v323_v1  ;;  %318 = vmatpush3.bf16.msra.mxu1 %v323_v1 }
   0x8   :  { %320 = vmatprep.subr.msk.bf16.mxu0 %vm123_vm1, %v324_v2  ;;  %321 = vmatprep.subr.msk.bf16.mxu1 %vm123_vm1, %v324_v2 }
   0xb   :  { %297 = vmatpush3.bf16.msra.mxu0 %v125_v5  ;;  %319 = vmatpush3.bf16.msra.mxu1 %v125_v5 }
   0xe   :  { %299 = vmatmul.mubr.msk.bf16.vlgmr.msra.gmra.mrb[0].mxu0 %vm98_vm0, %v327_v6  ;;  %307 = vmatmul.mubr.msk.bf16.vlgmr.msra.gmra.mrb[0].mxu1 %vm98_vm0, %v328_v7 }
   0xf   :  { %302 = vmatprep.mubr.msk.bf16.mxu0 %vm98_vm0, %v329_v8  ;;  %310 = vmatprep.mubr.msk.bf16.mxu1 %vm98_vm0, %v330_v9 }
  0x16   :  { %303 = vmatmul.mubr.msk.bf16.gmra.mrb[4].mxu0 %vm98_vm0, %v331_v10  ;;  %311 = vmatmul.mubr.msk.bf16.gmra.mrb[4].mxu1 %vm98_vm0, %v332_v11 }
  0xe1   :  { %v300_v13 = vpop.f32.mrb[0].mxu0  ;;  %v308_v14 = vpop.f32.mrb[0].mxu1 }
  0xe2   :  { %v170_v15 = vadd.f32 %v300_v13, %v261_v12  ;;  %v202_v16 = vadd.f32 %v308_v14, %v261_v12  ;;  %v161_v17 = vpop.f32.mrb[1].mxu0  ;;  %v193_v18 = vpop.f32.mrb[1].mxu1 }
  0xe3   :  { %v162_v19 = vadd.f32 %v261_v12, %v161_v17  ;;  %v194_v20 = vadd.f32 %v261_v12, %v193_v18  ;;  %v301_v21 = vpop.f32.mrb[2].mxu0  ;;  %v309_v22 = vpop.f32.mrb[2].mxu1 }
  0xe4   :  { %v226_v23 = vmax.f32 %v170_v15, 0.0  ;;  %v234_v24 = vmax.f32 %v202_v16, 0.0  ;;  %v173_v25 = vadd.f32 %v301_v21, %v261_v12  ;;  %v205_v26 = vadd.f32 %v309_v22, %v261_v12  ;;  %v164_v27 = vpop.f32.mrb[3].mxu0  ;;  %v196_v28 = vpop.f32.mrb[3].mxu1 }
  0xe5   :  { %v224_v29 = vmax.f32 %v162_v19, 0.0  ;;  %v232_v30 = vmax.f32 %v194_v20, 0.0  ;;  %v165_v31 = vadd.f32 %v261_v12, %v164_v27  ;;  %v197_v32 = vadd.f32 %v261_v12, %v196_v28 }
  0xe6   :  { %243 = vst.msk [vmem:[%s464_s3 + $0x10] sm:$0xff] %vm240_vm2, %v226_v23  ;;  %251 = vst.msk [vmem:[%s464_s3 + $0x50] sm:$0xff] %vm240_vm2, %v234_v24  ;;  %v227_v33 = vmax.f32 %v173_v25, 0.0  ;;  %v235_v34 = vmax.f32 %v205_v26, 0.0 }
  0xe7   :  { %241 = vst.msk [vmem:[%s464_s3] sm:$0xff] %vm240_vm2, %v224_v29  ;;  %249 = vst.msk [vmem:[%s464_s3 + $0x40] sm:$0xff] %vm240_vm2, %v232_v30  ;;  %v225_v35 = vmax.f32 %v165_v31, 0.0  ;;  %v233_v36 = vmax.f32 %v197_v32, 0.0 }
  0xe8   :  { %244 = vst.msk [vmem:[%s464_s3 + $0x18] sm:$0xff] %vm240_vm2, %v227_v33  ;;  %252 = vst.msk [vmem:[%s464_s3 + $0x58] sm:$0xff] %vm240_vm2, %v235_v34 }
  0xe9   :  { %242 = vst.msk [vmem:[%s464_s3 + $0x8] sm:$0xff] %vm240_vm2, %v225_v35  ;;  %250 = vst.msk [vmem:[%s464_s3 + $0x48] sm:$0xff] %vm240_vm2, %v233_v36  ;;  %v304_v37 = vpop.f32.mrb[4].mxu0  ;;  %v312_v38 = vpop.f32.mrb[4].mxu1 }
  0xea   :  { %v186_v39 = vadd.f32 %v304_v37, %v261_v12  ;;  %v218_v40 = vadd.f32 %v312_v38, %v261_v12  ;;  %v177_v41 = vpop.f32.mrb[5].mxu0  ;;  %v209_v42 = vpop.f32.mrb[5].mxu1 }
  0xeb   :  { %v178_v43 = vadd.f32 %v261_v12, %v177_v41  ;;  %v210_v44 = vadd.f32 %v261_v12, %v209_v42  ;;  %v305_v45 = vpop.f32.mrb[6].mxu0  ;;  %v313_v46 = vpop.f32.mrb[6].mxu1 }
  0xec   :  { %v230_v47 = vmax.f32 %v186_v39, 0.0  ;;  %v238_v48 = vmax.f32 %v218_v40, 0.0  ;;  %v189_v49 = vadd.f32 %v305_v45, %v261_v12  ;;  %v221_v50 = vadd.f32 %v313_v46, %v261_v12  ;;  %v180_v51 = vpop.f32.mrb[7].mxu0  ;;  %v212_v52 = vpop.f32.mrb[7].mxu1 }
  0xed   :  { %v228_v53 = vmax.f32 %v178_v43, 0.0  ;;  %v236_v54 = vmax.f32 %v210_v44, 0.0  ;;  %v181_v55 = vadd.f32 %v261_v12, %v180_v51  ;;  %v213_v56 = vadd.f32 %v261_v12, %v212_v52 }
  0xee   :  { %247 = vst.msk [vmem:[%s464_s3 + $0x30] sm:$0xff] %vm240_vm2, %v230_v47  ;;  %255 = vst.msk [vmem:[%s464_s3 + $0x70] sm:$0xff] %vm240_vm2, %v238_v48  ;;  %v231_v57 = vmax.f32 %v189_v49, 0.0  ;;  %v239_v58 = vmax.f32 %v221_v50, 0.0 }
  0xef   :  { %245 = vst.msk [vmem:[%s464_s3 + $0x20] sm:$0xff] %vm240_vm2, %v228_v53  ;;  %253 = vst.msk [vmem:[%s464_s3 + $0x60] sm:$0xff] %vm240_vm2, %v236_v54  ;;  %v229_v59 = vmax.f32 %v181_v55, 0.0  ;;  %v237_v60 = vmax.f32 %v213_v56, 0.0 }
  0xf0   :  { %248 = vst.msk [vmem:[%s464_s3 + $0x38] sm:$0xff] %vm240_vm2, %v231_v57  ;;  %256 = vst.msk [vmem:[%s464_s3 + $0x78] sm:$0xff] %vm240_vm2, %v239_v58 }
  0xf1   :  { %246 = vst.msk [vmem:[%s464_s3 + $0x28] sm:$0xff] %vm240_vm2, %v229_v59  ;;  %254 = vst.msk [vmem:[%s464_s3 + $0x68] sm:$0xff] %vm240_vm2, %v237_v60 }

</bundles_post_ra>
